<compile_context>
chip_gen: v5e
topology: v5e:2x2
jax: 0.10.0
libtpu: 0.0.40
codegen_flags: <defaults>
</compile_context>

<pallas_src>
import functools

import jax
import jax.numpy as jnp
from jax.experimental import pallas as pl
from jax.experimental.pallas import tpu as pltpu


def _round_up(x: int, m: int) -> int:
    return ((x + m - 1) // m) * m


def _linear_kernel(x_ref, w_ref, b_ref, o_ref, acc_ref):
    # x_ref: (tm, tk)   w_ref: (tk, tn)   b_ref: (1, tn)
    # o_ref: (tm, tn)   acc_ref: (tm, tn) f32 VMEM scratch
    k = pl.program_id(2)

    # Canonical MXU matmul with f32 accumulation (weight already transposed).
    prod = jnp.dot(x_ref[...], w_ref[...], preferred_element_type=jnp.float32)

    @pl.when(k == 0)
    def _init():
        acc_ref[...] = prod

    @pl.when(k > 0)
    def _accum():
        acc_ref[...] += prod

    # Epilogue: add bias exactly once, on the final k step, and store.
    @pl.when(k == pl.num_programs(2) - 1)
    def _finalize():
        o_ref[...] = (acc_ref[...] + b_ref[...]).astype(o_ref.dtype)


@functools.partial(jax.jit, static_argnames=("tm", "tn", "tk"))
def linear_forward(x, w, b, *, tm=256, tn=512, tk=512):
    """Pallas equivalent of `x.mm(w.t()) + b`.

    x: (B, input_dim) float32
    w: (output_dim, input_dim) float32   (PyTorch layout)
    b: (1, output_dim) float32
    returns: (B, output_dim) float32
    """
    B, K = x.shape
    N, Kw = w.shape
    assert K == Kw, "w must be (output_dim, input_dim)"
    assert b.shape == (1, N)

    # One-time HBM-side transpose: (K, N) so output_dim sits on the lane axis
    # for both the weight tile and the output tile (no per-tile XLU transpose
    # inside the kernel).
    w_t = w.T

    # Tile sizes: tm multiple of 8 (sublanes), tn/tk multiples of 128 (lanes).
    # Cap to the padded problem size so tiny problems don't over-pad.
    tm = min(tm, _round_up(B, 8))
    tn = min(tn, _round_up(N, 128))
    tk = min(tk, _round_up(K, 128))

    Mp = _round_up(B, tm)
    Np = _round_up(N, tn)
    Kp = _round_up(K, tk)

    # Zero-pad to tile multiples; padded K contributes zeros to the matmul,
    # padded M/N rows/cols are sliced off below.
    x_p = x if (Mp == B and Kp == K) else jnp.pad(x, ((0, Mp - B), (0, Kp - K)))
    w_p = w_t if (Kp == K and Np == N) else jnp.pad(w_t, ((0, Kp - K), (0, Np - N)))
    b_p = b if Np == N else jnp.pad(b, ((0, 0), (0, Np - N)))

    grid = (Mp // tm, Np // tn, Kp // tk)

    cost = pl.CostEstimate(
        flops=2 * B * K * N,
        transcendentals=0,
        bytes_accessed=4 * (B * K + K * N + B * N),
    )

    out_p = pl.pallas_call(
        _linear_kernel,
        out_shape=jax.ShapeDtypeStruct((Mp, Np), x.dtype),
        grid_spec=pltpu.PrefetchScalarGridSpec(
            num_scalar_prefetch=0,
            grid=grid,
            in_specs=[
                pl.BlockSpec((tm, tk), lambda i, j, k: (i, k)),   # x tile
                pl.BlockSpec((tk, tn), lambda i, j, k: (k, j)),   # w_t tile
                pl.BlockSpec((1, tn), lambda i, j, k: (0, j)),    # bias tile
            ],
            out_specs=pl.BlockSpec((tm, tn), lambda i, j, k: (i, j)),
            scratch_shapes=[pltpu.VMEM((tm, tn), jnp.float32)],
        ),
        compiler_params=pltpu.CompilerParams(
            dimension_semantics=("parallel", "parallel", "arbitrary"),
        ),
        cost_estimate=cost,
    )(x_p, w_p, b_p)

    return out_p[:B, :N]


if __name__ == "__main__":
    # Deterministic synthetic parameters / inputs (small shapes).
    batch = 8
    input_dim = 32
    output_dim = 16

    key = jax.random.PRNGKey(0)
    kx, kw, kb = jax.random.split(key, 3)

    x = jax.random.normal(kx, (batch, input_dim), dtype=jnp.float32)
    # w0, b0 as the PyTorch module receives them:
    #   w (output_dim, input_dim), b (1, output_dim)
    w = jax.random.normal(kw, (output_dim, input_dim), dtype=jnp.float32) * 0.1
    b = jax.random.normal(kb, (1, output_dim), dtype=jnp.float32) * 0.1

    out = linear_forward(x, w, b)
    out = jax.block_until_ready(out)

    # Reference check against plain JAX.
    ref = x @ w.T + b
    assert out.shape == (batch, output_dim)
    assert jnp.allclose(out, ref, atol=1e-5, rtol=1e-5)

    print("KERNEL_OK")
</pallas_src>

<mosaic_0001>
module attributes {stable_mosaic.version = 11 : i64} {
  func.func @_linear_kernel(%arg0: i32, %arg1: i32, %arg2: i32, %arg3: memref<8x128xf32, #tpu.memory_space<vmem>>, %arg4: memref<128x128xf32, #tpu.memory_space<vmem>>, %arg5: memref<1x128xf32, #tpu.memory_space<vmem>>, %arg6: memref<8x128xf32, #tpu.memory_space<vmem>>, %arg7: memref<8x128xf32, #tpu.memory_space<vmem>>) attributes {dimension_semantics = [#tpu.dimension_semantics<parallel>, #tpu.dimension_semantics<parallel>, #tpu.dimension_semantics<arbitrary>], iteration_bounds = array<i64: 1, 1, 1>, scalar_prefetch = 0 : i64, scratch_operands = 1 : i64, tpu.core_type = #tpu.core_type<tc>, window_params = [{transform_indices = @transform_0, window_bounds = array<i64: 8, 128>}, {transform_indices = @transform_1, window_bounds = array<i64: 128, 128>}, {transform_indices = @transform_2, window_bounds = array<i64: 1, 128>}, {transform_indices = @transform_3, window_bounds = array<i64: 8, 128>}]} {
    %c0 = arith.constant 0 : index
    %c0_0 = arith.constant 0 : index
    %0 = vector.load %arg3[%c0, %c0_0] : memref<8x128xf32, #tpu.memory_space<vmem>>, vector<8x128xf32>
    %c0_1 = arith.constant 0 : index
    %c0_2 = arith.constant 0 : index
    %1 = vector.load %arg4[%c0_1, %c0_2] : memref<128x128xf32, #tpu.memory_space<vmem>>, vector<128x128xf32>
    %cst = arith.constant dense<0.000000e+00> : vector<8x128xf32>
    %2 = tpu.matmul %0, %1, %cst {dimension_numbers = #tpu.dot_dimension_numbers<[1], [0], [0], [1], [0, 0, 1, 1], [], []>} : vector<8x128xf32>, vector<128x128xf32>, vector<8x128xf32> -> vector<8x128xf32>
    %c0_i32 = arith.constant 0 : i32
    %3 = arith.cmpi eq, %arg2, %c0_i32 : i32
    %4 = arith.extui %3 : i1 to i32
    %c0_i32_3 = arith.constant 0 : i32
    %5 = arith.cmpi ne, %4, %c0_i32_3 : i32
    scf.if %5 {
      %c0_8 = arith.constant 0 : index
      %c0_9 = arith.constant 0 : index
      %12 = vector.load %arg7[%c0_8, %c0_9] : memref<8x128xf32, #tpu.memory_space<vmem>>, vector<8x128xf32>
      tpu.vector_store %arg7[%c0_8, %c0_9], %2 {strides = array<i32>} : memref<8x128xf32, #tpu.memory_space<vmem>>, vector<8x128xf32>,
    } else {
    }
    %c0_i32_4 = arith.constant 0 : i32
    %6 = arith.cmpi sgt, %arg2, %c0_i32_4 : i32
    %7 = arith.extui %6 : i1 to i32
    %c0_i32_5 = arith.constant 0 : i32
    %8 = arith.cmpi ne, %7, %c0_i32_5 : i32
    scf.if %8 {
      %c0_8 = arith.constant 0 : index
      %c0_9 = arith.constant 0 : index
      %12 = vector.load %arg7[%c0_8, %c0_9] : memref<8x128xf32, #tpu.memory_space<vmem>>, vector<8x128xf32>
      %13 = arith.addf %12, %2 : vector<8x128xf32>
      %c0_10 = arith.constant 0 : index
      %c0_11 = arith.constant 0 : index
      %14 = vector.load %arg7[%c0_10, %c0_11] : memref<8x128xf32, #tpu.memory_space<vmem>>, vector<8x128xf32>
      tpu.vector_store %arg7[%c0_10, %c0_11], %13 {strides = array<i32>} : memref<8x128xf32, #tpu.memory_space<vmem>>, vector<8x128xf32>,
    } else {
    }
    %c0_i32_6 = arith.constant 0 : i32
    %9 = arith.cmpi eq, %arg2, %c0_i32_6 : i32
    %10 = arith.extui %9 : i1 to i32
    %c0_i32_7 = arith.constant 0 : i32
    %11 = arith.cmpi ne, %10, %c0_i32_7 : i32
    scf.if %11 {
      %c0_8 = arith.constant 0 : index
      %c0_9 = arith.constant 0 : index
      %12 = vector.load %arg7[%c0_8, %c0_9] : memref<8x128xf32, #tpu.memory_space<vmem>>, vector<8x128xf32>
      %c0_10 = arith.constant 0 : index
      %c0_11 = arith.constant 0 : index
      %13 = vector.load %arg5[%c0_10, %c0_11] : memref<1x128xf32, #tpu.memory_space<vmem>>, vector<1x128xf32>
      %14 = vector.broadcast %13 : vector<1x128xf32> to vector<8x128xf32>
      %15 = arith.addf %12, %14 : vector<8x128xf32>
      %c0_12 = arith.constant 0 : index
      %c0_13 = arith.constant 0 : index
      %16 = vector.load %arg6[%c0_12, %c0_13] : memref<8x128xf32, #tpu.memory_space<vmem>>, vector<8x128xf32>
      tpu.vector_store %arg6[%c0_12, %c0_13], %15 {strides = array<i32>} : memref<8x128xf32, #tpu.memory_space<vmem>>, vector<8x128xf32>,
    } else {
    }
    return
  }
  func.func @transform_0(%arg0: i32, %arg1: i32, %arg2: i32) -> (i32, i32) {
    %c0_i32 = arith.constant 0 : i32
    return %arg0, %arg2 : i32, i32
  }
  func.func @transform_1(%arg0: i32, %arg1: i32, %arg2: i32) -> (i32, i32) {
    %c0_i32 = arith.constant 0 : i32
    return %arg2, %arg1 : i32, i32
  }
  func.func @transform_2(%arg0: i32, %arg1: i32, %arg2: i32) -> (i32, i32) {
    %c0_i32 = arith.constant 0 : i32
    %c0_i32_0 = arith.constant 0 : i32
    return %c0_i32, %arg1 : i32, i32
  }
  func.func @transform_3(%arg0: i32, %arg1: i32, %arg2: i32) -> (i32, i32) {
    %c0_i32 = arith.constant 0 : i32
    return %arg0, %arg1 : i32, i32
  }
}

</mosaic_0001>

<bundles_post_ra>
// kernel: linear_forward.1
= control target key start
LH: loop header
LB: loop body
LE: loop exit
PB: predicated region body
PF: predicated region fallthrough
CT: control target
= control target key end

     0   :  { %s196_s0 = inlined_call_operand.vmem [shape: f32[8,128], index: 0, kind: input, shape index: {}]   ;;  %s197_s1 = inlined_call_operand.vmem [shape: f32[128,128], index: 1, kind: input, shape index: {}]   ;;  %s198_s2 = inlined_call_operand.vmem [shape: f32[1,128], index: 2, kind: input, shape index: {}]   ;;  %s199_s3 = inlined_call_operand.hbm [shape: f32[8,128], index: 3, kind: output, shape index: {}]  }
   0x1   :  { %v31_v0 = vld [vmem:[%s197_s1 + $0x78] sm:$0xff]  ;;  %v30_v1 = vld [vmem:[%s197_s1 + $0x70] sm:$0xff]  ;;  %v29_v2 = vld [vmem:[%s197_s1 + $0x68] sm:$0xff] }
   0x2   :  { %32 = vmatpush.msra.mxu0 %v31_v0  ;;  %v28_v3 = vld [vmem:[%s197_s1 + $0x60] sm:$0xff]  ;;  %v27_v4 = vld [vmem:[%s197_s1 + $0x58] sm:$0xff] }
   0x4   :  { %33 = vmatpush.msra.mxu0 %v30_v1 }
   0x6   :  { %34 = vmatpush.msra.mxu0 %v29_v2 }
   0x7   :  { %8 = vsyncpa [#allocation4], 0  ;;  %v26_v5 = vld [vmem:[%s197_s1 + $0x50] sm:$0xff]  ;;  %v25_v6 = vld [vmem:[%s197_s1 + $0x48] sm:$0xff]  ;;  %s118_s21 = smov [#allocation3]   ;;  %s81_s25 = sshll.u32 %s199_s3, 4  ;;  %s82_s25 = int_to_ptr.hbm [resolvable:$true] %s81_s25 }
   0x8   :  { %35 = vmatpush.msra.mxu0 %v28_v3  ;;  %v24_v7 = vld [vmem:[%s197_s1 + $0x40] sm:$0xff]  ;;  %v23_v8 = vld [vmem:[%s197_s1 + $0x38] sm:$0xff]  ;;  %v22_v9 = vld [vmem:[%s197_s1 + $0x30] sm:$0xff]  ;;  %s79_s22 = sshll.u32 %s118_s21, 4  ;;  %s80_s22 = int_to_ptr.vmem [resolvable:$true] %s79_s22 }
   0x9   :  { %v21_v10 = vld [vmem:[%s197_s1 + $0x28] sm:$0xff]  ;;  %v20_v11 = vld [vmem:[%s197_s1 + $0x20] sm:$0xff]  ;;  %v19_v12 = vld [vmem:[%s197_s1 + $0x18] sm:$0xff] }
   0xa   :  { %36 = vmatpush.msra.mxu0 %v27_v4  ;;  %v18_v13 = vld [vmem:[%s197_s1 + $0x10] sm:$0xff]  ;;  %v17_v14 = vld [vmem:[%s197_s1 + $0x8] sm:$0xff]  ;;  %v16_v15 = vld [vmem:[%s197_s1] sm:$0xff] }
   0xb   :  { %v15_v16 = vld [vmem:[%s196_s0] sm:$0xff] }
   0xc   :  { %37 = vmatpush.msra.mxu0 %v26_v5  ;;  %v91_v17 = vld [vmem:[%s198_s2] ss:$0 sm:$0xff] }
   0xe   :  { %38 = vmatpush.msra.mxu0 %v25_v6 }
  0x10   :  { %39 = vmatpush.msra.mxu0 %v24_v7 }
  0x12   :  { %40 = vmatpush.msra.mxu0 %v23_v8 }
  0x14   :  { %41 = vmatpush.msra.mxu0 %v22_v9 }
  0x16   :  { %42 = vmatpush.msra.mxu0 %v21_v10 }
  0x18   :  { %43 = vmatpush.msra.mxu0 %v20_v11 }
  0x1a   :  { %44 = vmatpush.msra.mxu0 %v19_v12 }
  0x1c   :  { %45 = vmatpush.msra.mxu0 %v18_v13 }
  0x1e   :  { %46 = vmatpush.msra.mxu0 %v17_v14 }
  0x20   :  { %47 = vmatpush.msra.mxu0 %v16_v15 }
  0x21   :  { %48 = vmatmul.f32.vlgmr.msra.gmra.mxu0 %v15_v16 }
  0x9e   :  { %v49_v18 = vpop.f32.mrf.mxu0 }
  0x9f   :  { %v72_v19 = vadd.f32 %v91_v17, %v49_v18 }
  0xa1   :  { %73 = vst [vmem:[#allocation3] sm:$0xff] %v72_v19 }
  0xa2   :  { %84 = dma.vmem_to_hbm [thread:$0]  %s80_s22, 128, %s82_s25, [#allocation4]  }
  0xa3   :  { %116 = dma.done.wait [#allocation4], 128  }
  0xa4   :  { %117 = vsyncadd [#allocation4], 4294967168 }
  0xa5   :  { %89 = vsyncpa [#allocation4], 1 }

</bundles_post_ra>
